<compile_context>
chip_gen: v7x
topology: tpu7x:2x2x1
jax: 0.10.0
libtpu: 0.0.40
codegen_flags: <defaults>
</compile_context>

<pallas_src>
import functools

import jax
import jax.numpy as jnp
from jax import lax
from jax.experimental import pallas as pl
from jax.experimental.pallas import tpu as pltpu


def _round_up(n: int, m: int) -> int:
    return pl.cdiv(n, m) * m


def _pick_tile(dim_p: int, candidates=(512, 256, 128)) -> int:
    """Largest candidate that evenly divides dim_p (dim_p is a multiple of 128)."""
    for c in candidates:
        if dim_p % c == 0:
            return c
    return dim_p


def prepare_linear_params(weight, bias, *, compute_dtype=jnp.bfloat16):
    """One-time parameter prep (done at init, NOT per forward call).

    Returns:
      w_t_pad: (in_p, out_p) weight, pre-transposed, compute dtype, lane-padded.
      b_pad:   (1, out_p) bias, f32, lane-padded.
    """
    out_features, in_features = weight.shape
    in_p = _round_up(in_features, 128)
    out_p = _round_up(out_features, 128)

    w_t = weight.T.astype(compute_dtype)                     # (in, out): MXU sees [K,N]
    if (in_p, out_p) != (in_features, out_features):
        w_t = jnp.pad(w_t, ((0, in_p - in_features), (0, out_p - out_features)))

    b = bias.astype(jnp.float32)
    if out_p != out_features:
        b = jnp.pad(b, (0, out_p - out_features))
    return w_t, b.reshape(1, out_p)


def linear_kernel(x_ref, w_ref, b_ref, o_ref, acc_ref, *, compute_dtype, precision):
    # x_ref:   (tile_m, tile_k)  caller dtype (e.g. f32) -- cast in-kernel
    # w_ref:   (tile_k, tile_n)  compute dtype, pre-transposed
    # b_ref:   (1, tile_n)       f32
    # o_ref:   (tile_m, tile_n)  output dtype
    # acc_ref: (tile_m, tile_n)  f32 VMEM accumulator
    k = pl.program_id(2)

    @pl.when(k == 0)
    def _init():
        # Fold the bias into the accumulator init; epilogue is just the cast.
        acc_ref[...] = jnp.broadcast_to(b_ref[...], acc_ref.shape)

    x = x_ref[...].astype(compute_dtype)   # VPU cast, hidden under the MXU push
    acc_ref[...] += jnp.dot(
        x, w_ref[...],
        preferred_element_type=jnp.float32,
        precision=precision,
    )

    @pl.when(k == pl.num_programs(2) - 1)
    def _store():
        o_ref[...] = acc_ref[...].astype(o_ref.dtype)


def fractional_linear(x, w_prepped, b_prepped, *, out_features,
                      compute_dtype=jnp.bfloat16,
                      tile_m=None, tile_n=None, tile_k=None):
    """y = x @ weight.T + bias, using params from prepare_linear_params()."""
    batch, in_features = x.shape
    in_p, out_p = w_prepped.shape
    assert in_p % 128 == 0 and out_p % 128 == 0 and in_p >= in_features
    assert b_prepped.shape == (1, out_p)
    out_dtype = x.dtype
    is_bf16 = jnp.dtype(compute_dtype) == jnp.dtype(jnp.bfloat16)

    # N/K tiles: multiples of 256 fill the v6e/v7x MXU; 128 is full-occupancy on v5e.
    if tile_n is None:
        tile_n = _pick_tile(out_p)
    if tile_k is None:
        tile_k = _pick_tile(in_p)
    # M tile: amortize per-step overhead, keep >=2 M steps for v7x's second TC when
    # the batch is large enough; round small batches to the sublane-packing width.
    if tile_m is None:
        if batch >= 1024:
            tile_m = 512
        elif batch >= 256:
            tile_m = _round_up(pl.cdiv(batch, 2), 128)
        else:
            sub = 16 if is_bf16 else 8
            tile_m = _round_up(batch, sub)
    m_p = _round_up(batch, tile_m)

    # Pad x only if needed (dtype cast happens inside the kernel).
    x_pad = x
    if (m_p, in_p) != (batch, in_features):
        x_pad = jnp.pad(x, ((0, m_p - batch), (0, in_p - in_features)))

    grid = (m_p // tile_m, out_p // tile_n, in_p // tile_k)

    # Explicit scoped-VMEM budget (defaults: 16 MiB v5e, 32 MiB v6e/v7x).
    c_itemsize = jnp.dtype(compute_dtype).itemsize
    vmem_usage = (2 * tile_m * tile_k * jnp.dtype(x.dtype).itemsize    # x (double-buffered)
                  + 2 * tile_k * tile_n * c_itemsize                   # weight tiles
                  + 2 * tile_m * tile_n * jnp.dtype(out_dtype).itemsize  # output tiles
                  + 2 * tile_n * 4                                     # bias
                  + tile_m * tile_n * 4)                               # f32 accumulator
    vmem_limit = min(max(2 * vmem_usage, 32 * 1024 * 1024), 60 * 1024 * 1024)

    precision = lax.Precision.HIGHEST if not is_bf16 else None
    kernel = functools.partial(linear_kernel,
                               compute_dtype=compute_dtype, precision=precision)

    y_pad = pl.pallas_call(
        kernel,
        out_shape=jax.ShapeDtypeStruct((m_p, out_p), out_dtype),
        grid_spec=pltpu.PrefetchScalarGridSpec(
            num_scalar_prefetch=0,
            grid=grid,
            in_specs=[
                pl.BlockSpec((tile_m, tile_k), lambda i, j, k: (i, k)),
                pl.BlockSpec((tile_k, tile_n), lambda i, j, k: (k, j)),
                pl.BlockSpec((1, tile_n), lambda i, j, k: (0, j)),
            ],
            out_specs=pl.BlockSpec((tile_m, tile_n), lambda i, j, k: (i, j)),
            scratch_shapes=[pltpu.VMEM((tile_m, tile_n), jnp.float32)],
        ),
        compiler_params=pltpu.CompilerParams(
            dimension_semantics=("parallel", "parallel", "arbitrary"),
            vmem_limit_bytes=vmem_limit,
        ),
    )(x_pad, w_prepped, b_prepped)

    if (m_p, out_p) == (batch, out_features):
        return y_pad
    return y_pad[:batch, :out_features]


if __name__ == "__main__":
    # Module shapes: SimpleFractionalLayer(in_features=32, out_features=32), batch=8.
    in_features = 32
    out_features = 32
    batch = 8

    key = jax.random.PRNGKey(0)
    kx, kw = jax.random.split(key)

    # Deterministic parameter init matching __init__ semantics:
    #   weight = randn(out_features, in_features) * 0.1 ; bias = zeros(out_features)
    weight = jax.random.normal(kw, (out_features, in_features), dtype=jnp.float32) * 0.1
    bias = jnp.zeros((out_features,), dtype=jnp.float32)
    x = jax.random.normal(kx, (batch, in_features), dtype=jnp.float32)

    # --- bf16 MXU path (f32 accumulation); params prepped once at "init" time. ---
    w_bf16, b_prep = prepare_linear_params(weight, bias, compute_dtype=jnp.bfloat16)
    y_bf16 = jax.block_until_ready(
        fractional_linear(x, w_bf16, b_prep, out_features=out_features,
                          compute_dtype=jnp.bfloat16))
    assert y_bf16.shape == (batch, out_features)
    # Reference with matching input quantization (products exact in f32 on the MXU).
    x_q = x.astype(jnp.bfloat16).astype(jnp.float32)
    w_q = weight.astype(jnp.bfloat16).astype(jnp.float32)
    y_ref_q = x_q @ w_q.T + bias
    assert jnp.allclose(y_bf16, y_ref_q, atol=1e-3, rtol=1e-3)

    # --- Full-precision path: exact F.linear semantics, HIGHEST matmul precision. ---
    w_f32, b_prep32 = prepare_linear_params(weight, bias, compute_dtype=jnp.float32)
    y_f32 = jax.block_until_ready(
        fractional_linear(x, w_f32, b_prep32, out_features=out_features,
                          compute_dtype=jnp.float32))
    y_ref = x @ weight.T + bias
    assert y_f32.shape == (batch, out_features)
    assert jnp.allclose(y_f32, y_ref, atol=1e-5, rtol=1e-5)

    print("KERNEL_OK")
</pallas_src>

<mosaic_0001>
module attributes {stable_mosaic.version = 11 : i64} {
  func.func @linear_kernel(%arg0: i32, %arg1: i32, %arg2: i32, %arg3: memref<16x128xf32, #tpu.memory_space<vmem>>, %arg4: memref<128x128xbf16, #tpu.memory_space<vmem>>, %arg5: memref<1x128xf32, #tpu.memory_space<vmem>>, %arg6: memref<16x128xf32, #tpu.memory_space<vmem>>, %arg7: memref<16x128xf32, #tpu.memory_space<vmem>>) attributes {dimension_semantics = [#tpu.dimension_semantics<parallel>, #tpu.dimension_semantics<parallel>, #tpu.dimension_semantics<arbitrary>], iteration_bounds = array<i64: 1, 1, 1>, scalar_prefetch = 0 : i64, scratch_operands = 1 : i64, tpu.core_type = #tpu.core_type<tc>, window_params = [{transform_indices = @transform_0, window_bounds = array<i64: 16, 128>}, {transform_indices = @transform_1, window_bounds = array<i64: 128, 128>}, {transform_indices = @transform_2, window_bounds = array<i64: 1, 128>}, {transform_indices = @transform_3, window_bounds = array<i64: 16, 128>}]} {
    %c0_i32 = arith.constant 0 : i32
    %0 = arith.cmpi eq, %arg2, %c0_i32 : i32
    %1 = arith.extui %0 : i1 to i32
    %c0_i32_0 = arith.constant 0 : i32
    %2 = arith.cmpi ne, %1, %c0_i32_0 : i32
    scf.if %2 {
      %c0_10 = arith.constant 0 : index
      %c0_11 = arith.constant 0 : index
      %13 = vector.load %arg5[%c0_10, %c0_11] : memref<1x128xf32, #tpu.memory_space<vmem>>, vector<1x128xf32>
      %14 = vector.shape_cast %13 : vector<1x128xf32> to vector<1x128xf32>
      %15 = vector.broadcast %14 : vector<1x128xf32> to vector<16x128xf32>
      %c0_12 = arith.constant 0 : index
      %c0_13 = arith.constant 0 : index
      %16 = vector.load %arg7[%c0_12, %c0_13] : memref<16x128xf32, #tpu.memory_space<vmem>>, vector<16x128xf32>
      tpu.vector_store %arg7[%c0_12, %c0_13], %15 {strides = array<i32>} : memref<16x128xf32, #tpu.memory_space<vmem>>, vector<16x128xf32>,
    } else {
    }
    %c0 = arith.constant 0 : index
    %c0_1 = arith.constant 0 : index
    %3 = vector.load %arg3[%c0, %c0_1] : memref<16x128xf32, #tpu.memory_space<vmem>>, vector<16x128xf32>
    %4 = arith.truncf %3 : vector<16x128xf32> to vector<16x128xbf16>
    %c0_2 = arith.constant 0 : index
    %c0_3 = arith.constant 0 : index
    %5 = vector.load %arg7[%c0_2, %c0_3] : memref<16x128xf32, #tpu.memory_space<vmem>>, vector<16x128xf32>
    %c0_4 = arith.constant 0 : index
    %c0_5 = arith.constant 0 : index
    %6 = vector.load %arg4[%c0_4, %c0_5] : memref<128x128xbf16, #tpu.memory_space<vmem>>, vector<128x128xbf16>
    %cst = arith.constant dense<0.000000e+00> : vector<16x128xf32>
    %7 = tpu.matmul %4, %6, %cst {dimension_numbers = #tpu.dot_dimension_numbers<[1], [0], [0], [1], [0, 0, 1, 1], [], []>} : vector<16x128xbf16>, vector<128x128xbf16>, vector<16x128xf32> -> vector<16x128xf32>
    %8 = arith.addf %5, %7 : vector<16x128xf32>
    %c0_6 = arith.constant 0 : index
    %c0_7 = arith.constant 0 : index
    %9 = vector.load %arg7[%c0_6, %c0_7] : memref<16x128xf32, #tpu.memory_space<vmem>>, vector<16x128xf32>
    tpu.vector_store %arg7[%c0_6, %c0_7], %8 {strides = array<i32>} : memref<16x128xf32, #tpu.memory_space<vmem>>, vector<16x128xf32>,
    %c0_i32_8 = arith.constant 0 : i32
    %10 = arith.cmpi eq, %arg2, %c0_i32_8 : i32
    %11 = arith.extui %10 : i1 to i32
    %c0_i32_9 = arith.constant 0 : i32
    %12 = arith.cmpi ne, %11, %c0_i32_9 : i32
    scf.if %12 {
      %c0_10 = arith.constant 0 : index
      %c0_11 = arith.constant 0 : index
      %13 = vector.load %arg7[%c0_10, %c0_11] : memref<16x128xf32, #tpu.memory_space<vmem>>, vector<16x128xf32>
      %c0_12 = arith.constant 0 : index
      %c0_13 = arith.constant 0 : index
      %14 = vector.load %arg6[%c0_12, %c0_13] : memref<16x128xf32, #tpu.memory_space<vmem>>, vector<16x128xf32>
      tpu.vector_store %arg6[%c0_12, %c0_13], %13 {strides = array<i32>} : memref<16x128xf32, #tpu.memory_space<vmem>>, vector<16x128xf32>,
    } else {
    }
    return
  }
  func.func @transform_0(%arg0: i32, %arg1: i32, %arg2: i32) -> (i32, i32) {
    %c0_i32 = arith.constant 0 : i32
    return %arg0, %arg2 : i32, i32
  }
  func.func @transform_1(%arg0: i32, %arg1: i32, %arg2: i32) -> (i32, i32) {
    %c0_i32 = arith.constant 0 : i32
    return %arg2, %arg1 : i32, i32
  }
  func.func @transform_2(%arg0: i32, %arg1: i32, %arg2: i32) -> (i32, i32) {
    %c0_i32 = arith.constant 0 : i32
    %c0_i32_0 = arith.constant 0 : i32
    return %c0_i32, %arg1 : i32, i32
  }
  func.func @transform_3(%arg0: i32, %arg1: i32, %arg2: i32) -> (i32, i32) {
    %c0_i32 = arith.constant 0 : i32
    return %arg0, %arg1 : i32, i32
  }
}

</mosaic_0001>

<bundles_post_ra>
// kernel: tpu_custom_call.1
= control target key start
LH: loop header
LB: loop body
LE: loop exit
PB: predicated region body
PF: predicated region fallthrough
CT: control target
= control target key end

     0   :  { %8 = vsyncpa [#allocation4], 0  ;;  %s397_s0 = inlined_call_operand.hbm [shape: f32[16,128], index: 0, kind: input, shape index: {}]   ;;  %s398_s1 = inlined_call_operand.hbm [shape: bf16[128,128], index: 1, kind: input, shape index: {}]   ;;  %s399_s2 = inlined_call_operand.vmem [shape: f32[1,128], index: 2, kind: input, shape index: {}]   ;;  %s400_s3 = inlined_call_operand.hbm [shape: f32[16,128], index: 3, kind: output, shape index: {}]  }
   0x1   :  { %9 = vsyncpa [#allocation7], 0 }
   0x2   :  { %10 = vsyncpa [#allocation5], 0  ;;  %s323_s12 = smov [#allocation3]   ;;  %s251_s16 = scalar_lea.hbm %s397_s0, 256 }
   0x3   :  { %s16_s13 = sshll.u32 %s323_s12, 4  ;;  %p252_p0 = scmp.ne.s32.totalorder %s397_s0, %s251_s16  ;;  %s17_s13 = int_to_ptr.vmem [resolvable:$true] %s16_s13 }
   0x4   :  { %p255_p1 = scmp.lt.u32.totalorder %s251_s16, %s397_s0 }
   0x6   :  { %p257_p2 = pnand %p255_p1, %p252_p0 }
   0x8   :  { %260 = shalt.err (!%p257_p2)
}
   0x9   :  { %s261_s21 = scalar_lea.vmem %s17_s13, 256  ;;  %p266_p4 = scmp.lt.s32.totalorder %s17_s13, %s17_s13 }
   0xa   :  { %p262_p3 = scmp.ne.s32.totalorder %s17_s13, %s261_s21  ;;  %p267_p5 = scmp.lt.s32.totalorder %s261_s21, %s261_s21 }
   0xc   :  { %p268_p6 = por %p267_p5, %p266_p4 }
   0xe   :  { %p269_p7 = pnand %p268_p6, %p262_p3 }
  0x10   :  { %272 = shalt.err (!%p269_p7)
}
  0x11   :  { %s324_s22 = smov 128   ;;  %s325_s23 = smov 8  }
  0x12   :  { %22 = dma.hbm_to_vmem [thread:$0]  %s397_s0, 256, %s17_s13, [#allocation4], %s324_s22, %s324_s22, %s325_s23  }
  0x13   :  { %s326_s26 = smov [#allocation6]   ;;  %s273_s30 = scalar_lea.hbm %s398_s1, 1024 }
  0x14   :  { %s28_s27 = sshll.u32 %s326_s26, 4  ;;  %p274_p8 = scmp.ne.s32.totalorder %s398_s1, %s273_s30  ;;  %s29_s27 = int_to_ptr.vmem [resolvable:$true] %s28_s27 }
  0x15   :  { %p277_p9 = scmp.lt.u32.totalorder %s273_s30, %s398_s1 }
  0x17   :  { %p279_p10 = pnand %p277_p9, %p274_p8 }
  0x19   :  { %282 = shalt.err (!%p279_p10)
}
  0x1a   :  { %s283_s8 = scalar_lea.vmem %s29_s27, 1024  ;;  %p288_p12 = scmp.lt.s32.totalorder %s29_s27, %s29_s27 }
  0x1b   :  { %p284_p11 = scmp.ne.s32.totalorder %s29_s27, %s283_s8  ;;  %p289_p13 = scmp.lt.s32.totalorder %s283_s8, %s283_s8 }
  0x1d   :  { %p290_p0 = por %p289_p13, %p288_p12 }
  0x1f   :  { %p291_p1 = pnand %p290_p0, %p284_p11 }
  0x21   :  { %294 = shalt.err (!%p291_p1)
}
  0x22   :  { %s327_s0 = smov 64   ;;  %s328_s9 = smov 4  }
  0x23   :  { %34 = dma.hbm_to_vmem [thread:$0]  %s398_s1, 1024, %s29_s27, [#allocation7], %s327_s0, %s327_s0, %s328_s9  }
  0x24   :  { %317 = dma.done.wait [#allocation4], 256  }
  0x25   :  { %318 = vsyncadd [#allocation4], 4294967040 }
  0x26   :  { %319 = dma.done.wait [#allocation7], 1024  }
  0x27   :  { %320 = vsyncadd [#allocation7], 4294966272  ;;  %v329_v0 = vmov 0.0   ;;  %vm330_vm0 = vmmov 0   ;;  %v243_v1 = vld [vmem:[#allocation6] sm:$0xff]   ;;  %v244_v2 = vld [vmem:[#allocation6 + $0x8] sm:$0xff]  }
  0x28   :  { %214 = vmatprep.subr.bf16.mxu0 %v329_v0  ;;  %230 = vmatprep.mubr.msk.bf16.mxu0 %vm330_vm0, %v329_v0  ;;  %v245_v3 = vld [vmem:[#allocation6 + $0x10] sm:$0xff]   ;;  %v246_v4 = vld [vmem:[#allocation6 + $0x18] sm:$0xff]   ;;  %v247_v5 = vld [vmem:[#allocation6 + $0x20] sm:$0xff]   ;;  %s331_s13 = smov [#allocation8]  }
  0x29   :  { %215 = vmatpush3.bf16.msra.mxu0 %v243_v1  ;;  %v248_v6 = vld [vmem:[#allocation6 + $0x28] sm:$0xff]   ;;  %v249_v7 = vld [vmem:[#allocation6 + $0x30] sm:$0xff]   ;;  %v250_v8 = vld [vmem:[#allocation6 + $0x38] sm:$0xff]   ;;  %s183_s14 = sshll.u32 %s331_s13, 4  ;;  %s184_s14 = int_to_ptr.vmem [resolvable:$true] %s183_s14 }
  0x2a   :  { %216 = vmatprep.subr.bf16.mxu0 %v329_v0  ;;  %v57_v9 = vld [vmem:[#allocation3] sm:$0xff]  ;;  %v58_v10 = vld [vmem:[#allocation3 + $0x8] sm:$0xff]  ;;  %s295_s15 = scalar_lea.vmem %s184_s14, 256  ;;  %p300_p3 = scmp.lt.s32.totalorder %s184_s14, %s184_s14 }
  0x2b   :  { %v59_v11 = vpack.c.bf16 %v58_v10, %v57_v9  ;;  %v196_v12 = vld [vmem:[%s399_s2] ss:$0 sm:$0xff]  ;;  %p296_p2 = scmp.ne.s32.totalorder %s184_s14, %s295_s15  ;;  %p301_p4 = scmp.lt.s32.totalorder %s295_s15, %s295_s15 }
  0x2d   :  { %217 = vmatpush3.bf16.msra.mxu0 %v244_v2  ;;  %p302_p5 = por %p301_p4, %p300_p3 }
  0x2e   :  { %218 = vmatprep.subr.bf16.mxu0 %v329_v0 }
  0x2f   :  { %p303_p6 = pnand %p302_p5, %p296_p2 }
  0x31   :  { %219 = vmatpush3.bf16.msra.mxu0 %v245_v3 }
  0x32   :  { %220 = vmatprep.subr.bf16.mxu0 %v329_v0 }
  0x35   :  { %221 = vmatpush3.bf16.msra.mxu0 %v246_v4 }
  0x36   :  { %222 = vmatprep.subr.bf16.mxu0 %v329_v0 }
  0x39   :  { %223 = vmatpush3.bf16.msra.mxu0 %v247_v5 }
  0x3a   :  { %224 = vmatprep.subr.bf16.mxu0 %v329_v0 }
  0x3d   :  { %225 = vmatpush3.bf16.msra.mxu0 %v248_v6 }
  0x3e   :  { %226 = vmatprep.subr.bf16.mxu0 %v329_v0 }
  0x41   :  { %227 = vmatpush3.bf16.msra.mxu0 %v249_v7 }
  0x42   :  { %228 = vmatprep.subr.bf16.mxu0 %v329_v0 }
  0x45   :  { %229 = vmatpush3.bf16.msra.mxu0 %v250_v8 }
  0x48   :  { %231 = vmatmul.mubr.bf16.vlgmr.msra.gmra.mrb[0].mxu0 %v59_v11 }
 0x11b   :  { %v160_v13 = vpop.f32.mrb[0].mxu0 }
 0x11c   :  { %v167_v14 = vadd.f32 %v196_v12, %v160_v13  ;;  %v232_v15 = vpop.f32.mrb[1].mxu0 }
 0x11d   :  { %v163_v16 = vpop.f32.mrb[2].mxu0 }
 0x11e   :  { %176 = vst [vmem:[#allocation8] sm:$0xff] %v167_v14  ;;  %v168_v17 = vadd.f32 %v196_v12, %v163_v16  ;;  %v233_v18 = vpop.f32.mrb[3].mxu0 }
 0x120   :  { %177 = vst [vmem:[#allocation8 + $0x8] sm:$0xff] %v168_v17 }
 0x121   :  { %306 = shalt.err (!%p303_p6)
}
 0x122   :  { %s307_s17 = scalar_lea.hbm %s400_s3, 256 }
 0x123   :  { %p308_p7 = scmp.ne.s32.totalorder %s400_s3, %s307_s17  ;;  %p311_p8 = scmp.lt.u32.totalorder %s307_s17, %s400_s3 }
 0x125   :  { %p313_p9 = pnand %p311_p8, %p308_p7 }
 0x127   :  { %316 = shalt.err (!%p313_p9)
}
 0x128   :  { %189 = dma.vmem_to_hbm [thread:$0]  %s184_s14, 256, %s400_s3, [#allocation5], %s324_s22, %s324_s22, %s325_s23  }
 0x129   :  { %321 = dma.done.wait [#allocation5], 256  }
 0x12a   :  { %322 = vsyncadd [#allocation5], 4294967040 }
 0x12b   :  { %193 = vsyncpa [#allocation4], 1 }
 0x12c   :  { %194 = vsyncpa [#allocation7], 1 }
 0x12d   :  { %195 = vsyncpa [#allocation5], 1 }

</bundles_post_ra>
